<compile_context>
chip_gen: v7x
topology: tpu7x:2x2x1
jax: 0.10.0
libtpu: 0.0.40
codegen_flags: <defaults>
</compile_context>

<pallas_src>
import functools

import jax
import jax.numpy as jnp
from jax.experimental import pallas as pl
from jax.experimental.pallas import tpu as pltpu

TK_MAX = 1024  # K-reduction tile (>=512 KB per x tile at tm=128, amortizes step overhead)


def _round_up(v, m):
    return ((v + m - 1) // m) * m


def _padded_k(K):
    Kp = _round_up(K, 128)
    tk = min(TK_MAX, Kp)
    return _round_up(Kp, tk)


def _vmem_estimate(tm, tk, Dp, Nout, has_head):
    est = (2 * tm * tk * 4        # x tiles, f32, double buffered
           + 2 * tk * Dp * 2      # body_w tiles, bf16, double buffered
           + tm * Dp * 4          # f32 accumulator scratch
           + 2 * tm * Nout * 4    # output tiles, f32, double buffered
           + 2 * Dp * 4)          # body bias resident (2 bufs)
    if has_head:
        est += 2 * Dp * Nout * 2 + 2 * Nout * 4   # head_w (bf16) + head_b residents
    return est


def _choose_tm(B, tk, Dp, Nout, has_head, budget=24 << 20):
    """Pick (tm, Mp) minimizing a proxy HBM-traffic cost under a VMEM budget.

    Cost model: 4 bytes/elem of x rows streamed (incl. padded rows) plus one
    bf16 body_w stream per M tile (~Dp row-equivalents of x traffic).
    """
    Bp = _round_up(max(B, 8), 8)
    best = None
    for tm in (512, 256, 128, 64, 32, 16, 8):
        if tm > 8 and _vmem_estimate(tm, tk, Dp, Nout, has_head) > budget:
            continue
        Mp = _round_up(Bp, tm)
        ntiles = Mp // tm
        cost = 4 * Mp + 2 * ntiles * Dp
        if best is None or cost < best[2]:
            best = (tm, Mp, cost)
    tm, Mp, _ = best
    # v7x megacore: make sure the "parallel" M axis has >=2 tiles when the
    # batch allows, so both TensorCores get work (costs one extra body_w
    # stream; compute-bound shapes still win ~2x on v7x).
    if Mp // tm == 1 and Mp >= 16:
        tm = Mp // 2
    return tm, Mp


def _compiler_params(vmem_est):
    limit = int(min(max(vmem_est * 5 // 4 + (2 << 20), 32 << 20), 48 << 20))
    return pltpu.CompilerParams(
        dimension_semantics=("parallel", "arbitrary"),
        vmem_limit_bytes=limit)


# ---------------------------------------------------------------------------
# Fused kernels
# ---------------------------------------------------------------------------
def _body_head_kernel(x_ref, bw_ref, bb_ref, hw_ref, hb_ref, o_ref, acc_ref):
    """body matmul (tiled over K, f32 accum, bias in init) + head matmul epilogue."""
    k = pl.program_id(1)

    @pl.when(k == 0)
    def _():
        # Fold body bias into the accumulator init (removes an epilogue add).
        acc_ref[...] = jnp.broadcast_to(bb_ref[...], acc_ref.shape)

    # bf16 MXU operands, f32 accumulation; x is cast in-kernel (VPU, hidden
    # under MXU work) so the wrapper never re-streams x for a cast pass.
    acc_ref[...] += jnp.dot(
        x_ref[...].astype(jnp.bfloat16), bw_ref[...],
        preferred_element_type=jnp.float32)

    @pl.when(k == pl.num_programs(1) - 1)
    def _():
        feats = acc_ref[...]                                     # [tm, Dp] f32
        # Head matmul with bf16 operands (MXU native), f32 accumulation; bias
        # add stays f32 (v5e VPU has no bf16 datapath).
        out = jnp.dot(feats.astype(jnp.bfloat16), hw_ref[...],
                      preferred_element_type=jnp.float32) + hb_ref[...]
        o_ref[...] = out.astype(o_ref.dtype)


def _body_norm_kernel(x_ref, bw_ref, bb_ref, o_ref, acc_ref):
    """body matmul (tiled over K, f32 accum, bias in init) + L2-normalize epilogue."""
    k = pl.program_id(1)

    @pl.when(k == 0)
    def _():
        acc_ref[...] = jnp.broadcast_to(bb_ref[...], acc_ref.shape)

    acc_ref[...] += jnp.dot(
        x_ref[...].astype(jnp.bfloat16), bw_ref[...],
        preferred_element_type=jnp.float32)

    @pl.when(k == pl.num_programs(1) - 1)
    def _():
        feats = acc_ref[...]                                     # [tm, Dp] f32
        # Padded D columns are exactly zero (zero-padded weights/bias), so the
        # squared norm equals the unpadded one.
        sq = jnp.sum(feats * feats, axis=1, keepdims=True)
        # 1 / max(||x||_2, 1e-12)  ==  rsqrt(max(sq, 1e-24))   (EUP op, f32)
        inv = jax.lax.rsqrt(jnp.maximum(sq, 1e-24))
        o_ref[...] = (feats * inv).astype(o_ref.dtype)


# ---------------------------------------------------------------------------
# Wrappers: tile, call pallas, slice back (weights are pre-padded/cast)
# ---------------------------------------------------------------------------
def fused_body_head(x2d, bw, bb, hw, hb, *, num_classes):
    B, K = x2d.shape
    Kp, Dp = bw.shape
    Np = hw.shape[1]
    tk = min(TK_MAX, Kp)                       # Kp is a multiple of tk by construction
    tm, Mp = _choose_tm(B, tk, Dp, Np, has_head=True)

    # x stays f32; pad only (no-op copy elided by XLA when already aligned).
    xp = jnp.pad(x2d, ((0, Mp - B), (0, Kp - K)))

    grid = (Mp // tm, Kp // tk)
    cost = pl.CostEstimate(
        flops=2 * Mp * Kp * Dp + 2 * Mp * Dp * Np,
        transcendentals=0,
        bytes_accessed=(Mp * Kp * 4 + (Mp // tm) * Kp * Dp * 2
                        + Dp * 4 + Dp * Np * 2 + Np * 4 + Mp * Np * 4),
    )

    out = pl.pallas_call(
        _body_head_kernel,
        out_shape=jax.ShapeDtypeStruct((Mp, Np), jnp.float32),
        grid_spec=pltpu.PrefetchScalarGridSpec(
            num_scalar_prefetch=0,
            grid=grid,
            in_specs=[
                pl.BlockSpec((tm, tk), lambda i, k: (i, k)),   # x tile (f32)
                pl.BlockSpec((tk, Dp), lambda i, k: (k, 0)),   # body_w tile (bf16)
                pl.BlockSpec((1, Dp), lambda i, k: (0, 0)),    # body_b (resident, f32)
                pl.BlockSpec((Dp, Np), lambda i, k: (0, 0)),   # head_w (resident, bf16)
                pl.BlockSpec((1, Np), lambda i, k: (0, 0)),    # head_b (resident, f32)
            ],
            out_specs=pl.BlockSpec((tm, Np), lambda i, k: (i, 0)),
            scratch_shapes=[pltpu.VMEM((tm, Dp), jnp.float32)],
        ),
        compiler_params=_compiler_params(_vmem_estimate(tm, tk, Dp, Np, True)),
        cost_estimate=cost,
    )(xp, bw, bb, hw, hb)
    return out[:B, :num_classes]


def fused_body_norm(x2d, bw, bb, *, feat_dim):
    B, K = x2d.shape
    Kp, Dp = bw.shape
    tk = min(TK_MAX, Kp)
    tm, Mp = _choose_tm(B, tk, Dp, Dp, has_head=False)

    xp = jnp.pad(x2d, ((0, Mp - B), (0, Kp - K)))

    grid = (Mp // tm, Kp // tk)
    cost = pl.CostEstimate(
        flops=2 * Mp * Kp * Dp + 3 * Mp * Dp,
        transcendentals=Mp,
        bytes_accessed=(Mp * Kp * 4 + (Mp // tm) * Kp * Dp * 2
                        + Dp * 4 + Mp * Dp * 4),
    )

    out = pl.pallas_call(
        _body_norm_kernel,
        out_shape=jax.ShapeDtypeStruct((Mp, Dp), jnp.float32),
        grid_spec=pltpu.PrefetchScalarGridSpec(
            num_scalar_prefetch=0,
            grid=grid,
            in_specs=[
                pl.BlockSpec((tm, tk), lambda i, k: (i, k)),   # x tile (f32)
                pl.BlockSpec((tk, Dp), lambda i, k: (k, 0)),   # body_w tile (bf16)
                pl.BlockSpec((1, Dp), lambda i, k: (0, 0)),    # body_b (resident, f32)
            ],
            out_specs=pl.BlockSpec((tm, Dp), lambda i, k: (i, 0)),
            scratch_shapes=[pltpu.VMEM((tm, Dp), jnp.float32)],
        ),
        compiler_params=_compiler_params(_vmem_estimate(tm, tk, Dp, Dp, False)),
        cost_estimate=cost,
    )(xp, bw, bb)
    return out[:B, :feat_dim]


# ---------------------------------------------------------------------------
# Params: raw -> prepared (pad + cast ONCE, hoisted out of the forward pass)
# ---------------------------------------------------------------------------
def make_params(key, in_dim, feat_dim, num_classes):
    k1, k2, k3, k4 = jax.random.split(key, 4)
    return {
        "body_w": (jax.random.normal(k1, (in_dim, feat_dim), jnp.float32)
                   * (1.0 / jnp.sqrt(in_dim))),
        "body_b": jax.random.normal(k2, (1, feat_dim), jnp.float32) * 0.01,
        "head_w": (jax.random.normal(k3, (feat_dim, num_classes), jnp.float32)
                   * (1.0 / jnp.sqrt(feat_dim))),
        "head_b": jax.random.normal(k4, (1, num_classes), jnp.float32) * 0.01,
    }


def prepare_params(params):
    """Pad to lane-dense shapes and cast matmul operands to bf16 — done once."""
    body_w, body_b = params["body_w"], params["body_b"]
    head_w, head_b = params["head_w"], params["head_b"]
    K, D = body_w.shape
    N = head_w.shape[1]
    Kp, Dp, Np = _padded_k(K), _round_up(D, 128), _round_up(N, 128)
    prepared = {
        "bw": jnp.pad(body_w, ((0, Kp - K), (0, Dp - D))).astype(jnp.bfloat16),
        "bb": jnp.pad(body_b.reshape(1, -1), ((0, 0), (0, Dp - D))).astype(jnp.float32),
        "hw": jnp.pad(head_w, ((0, Dp - D), (0, Np - N))).astype(jnp.bfloat16),
        "hb": jnp.pad(head_b.reshape(1, -1), ((0, 0), (0, Np - N))).astype(jnp.float32),
    }
    return prepared, (K, D, N)


# ---------------------------------------------------------------------------
# HeadSwitch forward (glue in plain JAX, compute in Pallas)
# ---------------------------------------------------------------------------
@functools.partial(jax.jit, static_argnames=("dims", "skip_head"))
def head_switch_forward(x_nchw, prepared, dims, skip_head=False):
    K, D, N = dims
    B = x_nchw.shape[0]
    x2d = x_nchw.reshape(B, -1)          # NCHW -> [B, C*H*W]
    # body is a linear here, so it never returns a tuple (original code's
    # `if type(x) == tuple: x = x[0]` is a no-op for this instantiation).
    if skip_head:
        return fused_body_norm(x2d, prepared["bw"], prepared["bb"], feat_dim=D)
    return fused_body_head(x2d, prepared["bw"], prepared["bb"],
                           prepared["hw"], prepared["hb"], num_classes=N)


if __name__ == "__main__":
    B, C, H, W = 2, 4, 16, 16
    FEAT_DIM, NUM_CLASSES = 32, 8

    key = jax.random.PRNGKey(0)
    kx, kp = jax.random.split(key)
    x = jax.random.normal(kx, (B, C, H, W), jnp.float32)        # NCHW input
    raw_params = make_params(kp, C * H * W, FEAT_DIM, NUM_CLASSES)
    prepared, dims = prepare_params(raw_params)                 # pad/cast once
    prepared = jax.tree_util.tree_map(jax.block_until_ready, prepared)

    # Path 1: body -> head (classification logits)
    logits = head_switch_forward(x, prepared, dims, skip_head=False)
    jax.block_until_ready(logits)

    # Path 2: body -> L2 normalize (skip_head=True)
    embeds = head_switch_forward(x, prepared, dims, skip_head=True)
    jax.block_until_ready(embeds)

    # Pure-JAX f32 reference (tolerances loosened for bf16 MXU operands).
    feats_ref = x.reshape(B, -1) @ raw_params["body_w"] + raw_params["body_b"]
    logits_ref = feats_ref @ raw_params["head_w"] + raw_params["head_b"]
    nrm = jnp.maximum(jnp.linalg.norm(feats_ref, axis=1, keepdims=True), 1e-12)
    embeds_ref = feats_ref / nrm

    assert logits.shape == (B, NUM_CLASSES)
    assert embeds.shape == (B, FEAT_DIM)
    assert jnp.allclose(logits, logits_ref, atol=3e-2, rtol=3e-2), (
        float(jnp.max(jnp.abs(logits - logits_ref))))
    assert jnp.allclose(embeds, embeds_ref, atol=3e-2, rtol=3e-2), (
        float(jnp.max(jnp.abs(embeds - embeds_ref))))

    print("KERNEL_OK")
</pallas_src>

<mosaic_0001>
module attributes {stable_mosaic.version = 11 : i64} {
  func.func @_body_head_kernel(%arg0: i32, %arg1: i32, %arg2: memref<8x1024xf32, #tpu.memory_space<vmem>>, %arg3: memref<1024x128xbf16, #tpu.memory_space<vmem>>, %arg4: memref<1x128xf32, #tpu.memory_space<vmem>>, %arg5: memref<128x128xbf16, #tpu.memory_space<vmem>>, %arg6: memref<1x128xf32, #tpu.memory_space<vmem>>, %arg7: memref<8x128xf32, #tpu.memory_space<vmem>>, %arg8: memref<8x128xf32, #tpu.memory_space<vmem>>) attributes {dimension_semantics = [#tpu.dimension_semantics<parallel>, #tpu.dimension_semantics<arbitrary>], iteration_bounds = array<i64: 1, 1>, scalar_prefetch = 0 : i64, scratch_operands = 1 : i64, tpu.core_type = #tpu.core_type<tc>, window_params = [{transform_indices = @transform_0, window_bounds = array<i64: 8, 1024>}, {transform_indices = @transform_1, window_bounds = array<i64: 1024, 128>}, {pipeline_mode = #tpu.pipeline_mode<synchronous>, transform_indices = @transform_2, window_bounds = array<i64: 1, 128>}, {pipeline_mode = #tpu.pipeline_mode<synchronous>, transform_indices = @transform_3, window_bounds = array<i64: 128, 128>}, {pipeline_mode = #tpu.pipeline_mode<synchronous>, transform_indices = @transform_4, window_bounds = array<i64: 1, 128>}, {transform_indices = @transform_5, window_bounds = array<i64: 8, 128>}]} {
    %c0_i32 = arith.constant 0 : i32
    %0 = arith.cmpi eq, %arg1, %c0_i32 : i32
    %1 = arith.extui %0 : i1 to i32
    %c0_i32_0 = arith.constant 0 : i32
    %2 = arith.cmpi ne, %1, %c0_i32_0 : i32
    scf.if %2 {
      %c0_10 = arith.constant 0 : index
      %c0_11 = arith.constant 0 : index
      %13 = vector.load %arg4[%c0_10, %c0_11] : memref<1x128xf32, #tpu.memory_space<vmem>>, vector<1x128xf32>
      %14 = vector.shape_cast %13 : vector<1x128xf32> to vector<1x128xf32>
      %15 = vector.broadcast %14 : vector<1x128xf32> to vector<8x128xf32>
      %c0_12 = arith.constant 0 : index
      %c0_13 = arith.constant 0 : index
      %16 = vector.load %arg8[%c0_12, %c0_13] : memref<8x128xf32, #tpu.memory_space<vmem>>, vector<8x128xf32>
      tpu.vector_store %arg8[%c0_12, %c0_13], %15 {strides = array<i32>} : memref<8x128xf32, #tpu.memory_space<vmem>>, vector<8x128xf32>,
    } else {
    }
    %c0 = arith.constant 0 : index
    %c0_1 = arith.constant 0 : index
    %3 = vector.load %arg8[%c0, %c0_1] : memref<8x128xf32, #tpu.memory_space<vmem>>, vector<8x128xf32>
    %c0_2 = arith.constant 0 : index
    %c0_3 = arith.constant 0 : index
    %4 = vector.load %arg2[%c0_2, %c0_3] : memref<8x1024xf32, #tpu.memory_space<vmem>>, vector<8x1024xf32>
    %5 = arith.truncf %4 : vector<8x1024xf32> to vector<8x1024xbf16>
    %c0_4 = arith.constant 0 : index
    %c0_5 = arith.constant 0 : index
    %6 = vector.load %arg3[%c0_4, %c0_5] : memref<1024x128xbf16, #tpu.memory_space<vmem>>, vector<1024x128xbf16>
    %cst = arith.constant dense<0.000000e+00> : vector<8x128xf32>
    %7 = tpu.matmul %5, %6, %cst {dimension_numbers = #tpu.dot_dimension_numbers<[1], [0], [0], [1], [0, 0, 1, 1], [], []>} : vector<8x1024xbf16>, vector<1024x128xbf16>, vector<8x128xf32> -> vector<8x128xf32>
    %8 = arith.addf %3, %7 : vector<8x128xf32>
    %c0_6 = arith.constant 0 : index
    %c0_7 = arith.constant 0 : index
    %9 = vector.load %arg8[%c0_6, %c0_7] : memref<8x128xf32, #tpu.memory_space<vmem>>, vector<8x128xf32>
    tpu.vector_store %arg8[%c0_6, %c0_7], %8 {strides = array<i32>} : memref<8x128xf32, #tpu.memory_space<vmem>>, vector<8x128xf32>,
    %c0_i32_8 = arith.constant 0 : i32
    %10 = arith.cmpi eq, %arg1, %c0_i32_8 : i32
    %11 = arith.extui %10 : i1 to i32
    %c0_i32_9 = arith.constant 0 : i32
    %12 = arith.cmpi ne, %11, %c0_i32_9 : i32
    scf.if %12 {
      %c0_10 = arith.constant 0 : index
      %c0_11 = arith.constant 0 : index
      %13 = vector.load %arg8[%c0_10, %c0_11] : memref<8x128xf32, #tpu.memory_space<vmem>>, vector<8x128xf32>
      %14 = arith.truncf %13 : vector<8x128xf32> to vector<8x128xbf16>
      %c0_12 = arith.constant 0 : index
      %c0_13 = arith.constant 0 : index
      %15 = vector.load %arg5[%c0_12, %c0_13] : memref<128x128xbf16, #tpu.memory_space<vmem>>, vector<128x128xbf16>
      %cst_14 = arith.constant dense<0.000000e+00> : vector<8x128xf32>
      %16 = tpu.matmul %14, %15, %cst_14 {dimension_numbers = #tpu.dot_dimension_numbers<[1], [0], [0], [1], [0, 0, 1, 1], [], []>} : vector<8x128xbf16>, vector<128x128xbf16>, vector<8x128xf32> -> vector<8x128xf32>
      %c0_15 = arith.constant 0 : index
      %c0_16 = arith.constant 0 : index
      %17 = vector.load %arg6[%c0_15, %c0_16] : memref<1x128xf32, #tpu.memory_space<vmem>>, vector<1x128xf32>
      %18 = vector.broadcast %17 : vector<1x128xf32> to vector<8x128xf32>
      %19 = arith.addf %16, %18 : vector<8x128xf32>
      %c0_17 = arith.constant 0 : index
      %c0_18 = arith.constant 0 : index
      %20 = vector.load %arg7[%c0_17, %c0_18] : memref<8x128xf32, #tpu.memory_space<vmem>>, vector<8x128xf32>
      tpu.vector_store %arg7[%c0_17, %c0_18], %19 {strides = array<i32>} : memref<8x128xf32, #tpu.memory_space<vmem>>, vector<8x128xf32>,
    } else {
    }
    return
  }
  func.func @transform_0(%arg0: i32, %arg1: i32) -> (i32, i32) {
    %c0_i32 = arith.constant 0 : i32
    return %arg0, %arg1 : i32, i32
  }
  func.func @transform_1(%arg0: i32, %arg1: i32) -> (i32, i32) {
    %c0_i32 = arith.constant 0 : i32
    %c0_i32_0 = arith.constant 0 : i32
    return %arg1, %c0_i32 : i32, i32
  }
  func.func @transform_2(%arg0: i32, %arg1: i32) -> (i32, i32) {
    %c0_i32 = arith.constant 0 : i32
    %c0_i32_0 = arith.constant 0 : i32
    %c0_i32_1 = arith.constant 0 : i32
    return %c0_i32, %c0_i32_0 : i32, i32
  }
  func.func @transform_3(%arg0: i32, %arg1: i32) -> (i32, i32) {
    %c0_i32 = arith.constant 0 : i32
    %c0_i32_0 = arith.constant 0 : i32
    %c0_i32_1 = arith.constant 0 : i32
    return %c0_i32, %c0_i32_0 : i32, i32
  }
  func.func @transform_4(%arg0: i32, %arg1: i32) -> (i32, i32) {
    %c0_i32 = arith.constant 0 : i32
    %c0_i32_0 = arith.constant 0 : i32
    %c0_i32_1 = arith.constant 0 : i32
    return %c0_i32, %c0_i32_0 : i32, i32
  }
  func.func @transform_5(%arg0: i32, %arg1: i32) -> (i32, i32) {
    %c0_i32 = arith.constant 0 : i32
    %c0_i32_0 = arith.constant 0 : i32
    return %arg0, %c0_i32 : i32, i32
  }
}

</mosaic_0001>

<bundles_post_ra>
// kernel: head_switch_forward.1
= control target key start
LH: loop header
LB: loop body
LE: loop exit
PB: predicated region body
PF: predicated region fallthrough
CT: control target
= control target key end

     0   :  { %10 = vsyncpa [#allocation4], 0  ;;  %s1152_s18 = smov [#allocation3]   ;;  %s1256_s0 = inlined_call_operand.vmem [shape: f32[8,1024], index: 0, kind: input, shape index: {}]   ;;  %s1257_s1 = inlined_call_operand.hbm [shape: bf16[1024,128], index: 1, kind: input, shape index: {}]   ;;  %s1258_s2 = inlined_call_operand.vmem [shape: f32[1,128], index: 2, kind: input, shape index: {}]   ;;  %s1259_s3 = inlined_call_operand.vmem [shape: bf16[128,128], index: 3, kind: input, shape index: {}]   ;;  %s1260_s4 = inlined_call_operand.vmem [shape: f32[1,128], index: 4, kind: input, shape index: {}]   ;;  %s1261_s5 = inlined_call_operand.vmem [shape: f32[8,128], index: 5, kind: output, shape index: {}]  }
   0x1   :  { %s18_s19 = sshll.u32 %s1152_s18, 4  ;;  %s1128_s22 = scalar_lea.hbm %s1257_s1, 8192  ;;  %s19_s19 = int_to_ptr.vmem [resolvable:$true] %s18_s19 }
   0x2   :  { %p1129_p0 = scmp.ne.s32.totalorder %s1257_s1, %s1128_s22  ;;  %p1132_p1 = scmp.lt.u32.totalorder %s1128_s22, %s1257_s1 }
   0x4   :  { %p1134_p2 = pnand %p1132_p1, %p1129_p0 }
   0x6   :  { %1137 = shalt.err (!%p1134_p2)
}
   0x7   :  { %s1138_s27 = scalar_lea.vmem %s19_s19, 8192  ;;  %p1143_p4 = scmp.lt.s32.totalorder %s19_s19, %s19_s19 }
   0x8   :  { %p1139_p3 = scmp.ne.s32.totalorder %s19_s19, %s1138_s27  ;;  %p1144_p5 = scmp.lt.s32.totalorder %s1138_s27, %s1138_s27 }
   0xa   :  { %p1145_p6 = por %p1144_p5, %p1143_p4 }
   0xc   :  { %p1146_p7 = pnand %p1145_p6, %p1139_p3 }
   0xe   :  { %1149 = shalt.err (!%p1146_p7)
}
   0xf   :  { %s1153_s28 = smov 64   ;;  %s1154_s29 = smov 4  }
  0x10   :  { %24 = dma.hbm_to_vmem [thread:$0]  %s1257_s1, 8192, %s19_s19, [#allocation4], %s1153_s28, %s1153_s28, %s1154_s29  }
  0x11   :  { %1150 = dma.done.wait [#allocation4], 8192  }
  0x12   :  { %1151 = vsyncadd [#allocation4], 4294959104  ;;  %v1056_v0 = vld [vmem:[#allocation3 + $0x40] sm:$0xff]   ;;  %v1060_v4 = vld [vmem:[#allocation3 + $0x48] sm:$0xff]   ;;  %vm1156_vm0 = vmmov 0  }
  0x13   :  { %v1057_v1 = vld [vmem:[#allocation3 + $0xc0] sm:$0xff]   ;;  %934 = vmatprep.subr.bf16.mxu0 %v1056_v0  ;;  %v1061_v5 = vld [vmem:[#allocation3 + $0xc8] sm:$0xff]   ;;  %v1064_v8 = vld [vmem:[#allocation3 + $0x50] sm:$0xff]  }
  0x14   :  { %v1058_v2 = vld [vmem:[#allocation3] sm:$0xff]   ;;  %956 = vmatprep.subr.bf16.mxu1 %v1057_v1  ;;  %v1062_v6 = vld [vmem:[#allocation3 + $0x8] sm:$0xff]   ;;  %v1065_v9 = vld [vmem:[#allocation3 + $0xd0] sm:$0xff]  }
  0x15   :  { %v1059_v3 = vld [vmem:[#allocation3 + $0x80] sm:$0xff]   ;;  %935 = vmatpush3.bf16.msra.mxu0 %v1058_v2  ;;  %v1063_v7 = vld [vmem:[#allocation3 + $0x88] sm:$0xff]   ;;  %v1066_v10 = vld [vmem:[#allocation3 + $0x10] sm:$0xff]  }
  0x16   :  { %957 = vmatpush3.bf16.msra.mxu1 %v1059_v3  ;;  %936 = vmatprep.subr.bf16.mxu0 %v1060_v4  ;;  %v1067_v11 = vld [vmem:[#allocation3 + $0x90] sm:$0xff]   ;;  %v1068_v12 = vld [vmem:[#allocation3 + $0x58] sm:$0xff]   ;;  %v1072_v16 = vld [vmem:[#allocation3 + $0x60] sm:$0xff]  }
  0x17   :  { %958 = vmatprep.subr.bf16.mxu1 %v1061_v5  ;;  %v1069_v13 = vld [vmem:[#allocation3 + $0xd8] sm:$0xff]   ;;  %v1073_v17 = vld [vmem:[#allocation3 + $0xe0] sm:$0xff]   ;;  %v1076_v20 = vld [vmem:[#allocation3 + $0x68] sm:$0xff]  }
  0x18   :  { %v1070_v14 = vld [vmem:[#allocation3 + $0x18] sm:$0xff]   ;;  %v1074_v18 = vld [vmem:[#allocation3 + $0x20] sm:$0xff]   ;;  %v1077_v21 = vld [vmem:[#allocation3 + $0xe8] sm:$0xff]  }
  0x19   :  { %937 = vmatpush3.bf16.msra.mxu0 %v1062_v6  ;;  %v1071_v15 = vld [vmem:[#allocation3 + $0x98] sm:$0xff]   ;;  %v1075_v19 = vld [vmem:[#allocation3 + $0xa0] sm:$0xff]   ;;  %v1078_v22 = vld [vmem:[#allocation3 + $0x28] sm:$0xff]  }
  0x1a   :  { %959 = vmatpush3.bf16.msra.mxu1 %v1063_v7  ;;  %938 = vmatprep.subr.bf16.mxu0 %v1064_v8  ;;  %v1079_v23 = vld [vmem:[#allocation3 + $0xa8] sm:$0xff]   ;;  %v1080_v24 = vld [vmem:[#allocation3 + $0x70] sm:$0xff]   ;;  %v1084_v28 = vld [vmem:[#allocation3 + $0x78] sm:$0xff]  }
  0x1b   :  { %960 = vmatprep.subr.bf16.mxu1 %v1065_v9  ;;  %v1081_v25 = vld [vmem:[#allocation3 + $0xf0] sm:$0xff]   ;;  %v1085_v29 = vld [vmem:[#allocation3 + $0xf8] sm:$0xff]   ;;  %v49_v32 = vld [vmem:[%s1256_s0 + $0x8] sm:$0xff] }
  0x1c   :  { %v1082_v26 = vld [vmem:[#allocation3 + $0x30] sm:$0xff]   ;;  %v1086_v30 = vld [vmem:[#allocation3 + $0x38] sm:$0xff]   ;;  %v48_v34 = vld [vmem:[%s1256_s0] sm:$0xff]  ;;  %v57_v35 = vpack.c.bf16 %v49_v32, %v49_v32 }
  0x1d   :  { %939 = vmatpush3.bf16.msra.mxu0 %v1066_v10  ;;  %v1083_v27 = vld [vmem:[#allocation3 + $0xb0] sm:$0xff]   ;;  %v1087_v31 = vld [vmem:[#allocation3 + $0xb8] sm:$0xff]   ;;  %v56_v37 = vpack.c.bf16 %v48_v34, %v48_v34  ;;  %v1088_v40 = vld [vmem:[#allocation3 + $0x140] sm:$0xff]  }
  0x1e   :  { %961 = vmatpush3.bf16.msra.mxu1 %v1067_v11  ;;  %940 = vmatprep.subr.bf16.mxu0 %v1068_v12  ;;  %v51_v33 = vld [vmem:[%s1256_s0 + $0x18] sm:$0xff]  ;;  %v50_v38 = vld [vmem:[%s1256_s0 + $0x10] sm:$0xff]  ;;  %v1089_v41 = vld [vmem:[#allocation3 + $0x1c0] sm:$0xff]  }
  0x1f   :  { %962 = vmatprep.subr.bf16.mxu1 %v1069_v13  ;;  %v59_v36 = vpack.c.bf16 %v51_v33, %v51_v33  ;;  %v58_v39 = vpack.c.bf16 %v50_v38, %v50_v38  ;;  %608 = vmatprep.mubr.bf16.mxu0 %v57_v35  ;;  %v1090_v42 = vld [vmem:[#allocation3 + $0x100] sm:$0xff]   ;;  %v1092_v44 = vld [vmem:[#allocation3 + $0x148] sm:$0xff]   ;;  %v1096_v48 = vld [vmem:[#allocation3 + $0x150] sm:$0xff]  }
  0x20   :  { %v1091_v43 = vld [vmem:[#allocation3 + $0x180] sm:$0xff]   ;;  %v1093_v45 = vld [vmem:[#allocation3 + $0x1c8] sm:$0xff]   ;;  %v1097_v49 = vld [vmem:[#allocation3 + $0x1d0] sm:$0xff]  }
  0x21   :  { %941 = vmatpush3.bf16.msra.mxu0 %v1070_v14  ;;  %648 = vmatprep.mubr.bf16.mxu1 %v59_v36  ;;  %v1094_v46 = vld [vmem:[#allocation3 + $0x108] sm:$0xff]   ;;  %v1098_v50 = vld [vmem:[#allocation3 + $0x110] sm:$0xff]   ;;  %v1100_v52 = vld [vmem:[#allocation3 + $0x158] sm:$0xff]  }
  0x22   :  { %963 = vmatpush3.bf16.msra.mxu1 %v1071_v15  ;;  %942 = vmatprep.subr.bf16.mxu0 %v1072_v16  ;;  %v1095_v47 = vld [vmem:[#allocation3 + $0x188] sm:$0xff]   ;;  %v1099_v51 = vld [vmem:[#allocation3 + $0x190] sm:$0xff]   ;;  %v1101_v53 = vld [vmem:[#allocation3 + $0x1d8] sm:$0xff]  }
  0x23   :  { %964 = vmatprep.subr.bf16.mxu1 %v1073_v17  ;;  %v1102_v54 = vld [vmem:[#allocation3 + $0x118] sm:$0xff]   ;;  %v1104_v56 = vld [vmem:[#allocation3 + $0x160] sm:$0xff]   ;;  %v1108_v60 = vld [vmem:[#allocation3 + $0x168] sm:$0xff]   ;;  %v1155_v17 = vmov 0.0  }
  0x24   :  { %v1103_v55 = vld [vmem:[#allocation3 + $0x198] sm:$0xff]   ;;  %v1105_v57 = vld [vmem:[#allocation3 + $0x1e0] sm:$0xff]   ;;  %v1109_v61 = vld [vmem:[#allocation3 + $0x1e8] sm:$0xff]  }
  0x25   :  { %943 = vmatpush3.bf16.msra.mxu0 %v1074_v18  ;;  %v1106_v58 = vld [vmem:[#allocation3 + $0x120] sm:$0xff]   ;;  %v1110_v62 = vld [vmem:[#allocation3 + $0x128] sm:$0xff]   ;;  %v1112_v0 = vld [vmem:[#allocation3 + $0x170] sm:$0xff]  }
  0x26   :  { %965 = vmatpush3.bf16.msra.mxu1 %v1075_v19  ;;  %944 = vmatprep.subr.bf16.mxu0 %v1076_v20  ;;  %v1107_v59 = vld [vmem:[#allocation3 + $0x1a0] sm:$0xff]   ;;  %v1111_v63 = vld [vmem:[#allocation3 + $0x1a8] sm:$0xff]   ;;  %v1113_v1 = vld [vmem:[#allocation3 + $0x1f0] sm:$0xff]  }
  0x27   :  { %966 = vmatprep.subr.bf16.mxu1 %v1077_v21  ;;  %v1114_v2 = vld [vmem:[#allocation3 + $0x130] sm:$0xff]   ;;  %v1116_v4 = vld [vmem:[#allocation3 + $0x178] sm:$0xff]   ;;  %v53_v8 = vld [vmem:[%s1256_s0 + $0x28] sm:$0xff] }
  0x28   :  { %v1115_v3 = vld [vmem:[#allocation3 + $0x1b0] sm:$0xff]   ;;  %v1117_v5 = vld [vmem:[#allocation3 + $0x1f8] sm:$0xff]   ;;  %v61_v10 = vpack.c.bf16 %v53_v8, %v53_v8  ;;  %v52_v12 = vld [vmem:[%s1256_s0 + $0x20] sm:$0xff] }
  0x29   :  { %945 = vmatpush3.bf16.msra.mxu0 %v1078_v22  ;;  %v1118_v6 = vld [vmem:[#allocation3 + $0x138] sm:$0xff]   ;;  %v54_v13 = vld [vmem:[%s1256_s0 + $0x30] sm:$0xff]  ;;  %v60_v14 = vpack.c.bf16 %v52_v12, %v52_v12  ;;  %v1120_v16 = vld [vmem:[%s1259_s3] sm:$0xff]  }
  0x2a   :  { %967 = vmatpush3.bf16.msra.mxu1 %v1079_v23  ;;  %946 = vmatprep.subr.bf16.mxu0 %v1080_v24  ;;  %v1119_v7 = vld [vmem:[#allocation3 + $0x1b8] sm:$0xff]   ;;  %v62_v15 = vpack.c.bf16 %v54_v13, %v54_v13  ;;  %v1121_v18 = vld [vmem:[%s1259_s3 + $0x8] sm:$0xff]   ;;  %v1122_v19 = vld [vmem:[%s1259_s3 + $0x10] sm:$0xff]  }
  0x2b   :  { %968 = vmatprep.subr.bf16.mxu1 %v1081_v25  ;;  %v55_v9 = vld [vmem:[%s1256_s0 + $0x38] sm:$0xff]  ;;  %v1124_v21 = vld [vmem:[%s1259_s3 + $0x20] sm:$0xff]   ;;  %v1125_v22 = vld [vmem:[%s1259_s3 + $0x28] sm:$0xff]  }
  0x2c   :  { %v63_v11 = vpack.c.bf16 %v55_v9, %v55_v9  ;;  %v1123_v20 = vld [vmem:[%s1259_s3 + $0x18] sm:$0xff]   ;;  %v1126_v23 = vld [vmem:[%s1259_s3 + $0x30] sm:$0xff]  }
  0x2d   :  { %947 = vmatpush3.bf16.msra.mxu0 %v1082_v26  ;;  %v1127_v24 = vld [vmem:[%s1259_s3 + $0x38] sm:$0xff]  }
  0x2e   :  { %969 = vmatpush3.bf16.msra.mxu1 %v1083_v27  ;;  %948 = vmatprep.subr.bf16.mxu0 %v1084_v28 }
  0x2f   :  { %970 = vmatprep.subr.bf16.mxu1 %v1085_v29 }
  0x31   :  { %949 = vmatpush3.bf16.msra.mxu0 %v1086_v30 }
  0x32   :  { %971 = vmatpush3.bf16.msra.mxu1 %v1087_v31  ;;  %978 = vmatprep.subr.bf16.mxu0 %v1088_v40 }
  0x33   :  { %1000 = vmatprep.subr.bf16.mxu1 %v1089_v41 }
  0x34   :  { %609 = vmatmul.mubr.bf16.vlgmr.msra.gmra.mrb[0].mxu0 %v56_v37 }
  0x35   :  { %649 = vmatmul.mubr.bf16.vlgmr.msra.gmra.mrb[0].mxu1 %v58_v39  ;;  %979 = vmatpush3.bf16.msra.mxu0 %v1090_v42 }
  0x36   :  { %1001 = vmatpush3.bf16.msra.mxu1 %v1091_v43  ;;  %980 = vmatprep.subr.bf16.mxu0 %v1092_v44 }
  0x37   :  { %1002 = vmatprep.subr.bf16.mxu1 %v1093_v45  ;;  %688 = vmatprep.mubr.bf16.mxu0 %v61_v10 }
  0x38   :  { %728 = vmatprep.mubr.bf16.mxu1 %v63_v11 }
  0x39   :  { %981 = vmatpush3.bf16.msra.mxu0 %v1094_v46 }
  0x3a   :  { %1003 = vmatpush3.bf16.msra.mxu1 %v1095_v47  ;;  %982 = vmatprep.subr.bf16.mxu0 %v1096_v48  ;;  %v860_v47 = vld [vmem:[%s1258_s2] ss:$0 sm:$0xff] }
  0x3b   :  { %1004 = vmatprep.subr.bf16.mxu1 %v1097_v49 }
  0x3d   :  { %983 = vmatpush3.bf16.msra.mxu0 %v1098_v50 }
  0x3e   :  { %1005 = vmatpush3.bf16.msra.mxu1 %v1099_v51  ;;  %984 = vmatprep.subr.bf16.mxu0 %v1100_v52  ;;  %v925_v51 = vld [vmem:[%s1260_s4] ss:$0 sm:$0xff] }
  0x3f   :  { %1006 = vmatprep.subr.bf16.mxu1 %v1101_v53 }
  0x41   :  { %985 = vmatpush3.bf16.msra.mxu0 %v1102_v54 }
  0x42   :  { %1007 = vmatpush3.bf16.msra.mxu1 %v1103_v55  ;;  %986 = vmatprep.subr.bf16.mxu0 %v1104_v56 }
  0x43   :  { %1008 = vmatprep.subr.bf16.mxu1 %v1105_v57 }
  0x45   :  { %987 = vmatpush3.bf16.msra.mxu0 %v1106_v58 }
  0x46   :  { %1009 = vmatpush3.bf16.msra.mxu1 %v1107_v59  ;;  %988 = vmatprep.subr.bf16.mxu0 %v1108_v60 }
  0x47   :  { %1010 = vmatprep.subr.bf16.mxu1 %v1109_v61 }
  0x49   :  { %989 = vmatpush3.bf16.msra.mxu0 %v1110_v62 }
  0x4a   :  { %1011 = vmatpush3.bf16.msra.mxu1 %v1111_v63  ;;  %990 = vmatprep.subr.bf16.mxu0 %v1112_v0 }
  0x4b   :  { %1012 = vmatprep.subr.bf16.mxu1 %v1113_v1 }
  0x4d   :  { %991 = vmatpush3.bf16.msra.mxu0 %v1114_v2 }
  0x4e   :  { %1013 = vmatpush3.bf16.msra.mxu1 %v1115_v3  ;;  %992 = vmatprep.subr.bf16.mxu0 %v1116_v4 }
  0x4f   :  { %1014 = vmatprep.subr.bf16.mxu1 %v1117_v5 }
  0x51   :  { %993 = vmatpush3.bf16.msra.mxu0 %v1118_v6 }
  0x52   :  { %1015 = vmatpush3.bf16.msra.mxu1 %v1119_v7  ;;  %1031 = vmatprep.subr.bf16.mxu0 %v1155_v17 }
  0x54   :  { %689 = vmatmul.mubr.bf16.vlgmr.msra.gmra.mrb[4].mxu0 %v60_v14 }
  0x55   :  { %729 = vmatmul.mubr.bf16.vlgmr.msra.gmra.mrb[4].mxu1 %v62_v15  ;;  %1032 = vmatpush3.bf16.msra.mxu0 %v1120_v16 }
  0x56   :  { %1033 = vmatprep.subr.bf16.mxu0 %v1155_v17  ;;  %1047 = vmatprep.mubr.msk.bf16.mxu0 %vm1156_vm0, %v1155_v17 }
  0x59   :  { %1034 = vmatpush3.bf16.msra.mxu0 %v1121_v18 }
  0x5a   :  { %1035 = vmatprep.subr.bf16.mxu0 %v1155_v17 }
  0x5d   :  { %1036 = vmatpush3.bf16.msra.mxu0 %v1122_v19 }
  0x5e   :  { %1037 = vmatprep.subr.bf16.mxu0 %v1155_v17 }
  0x61   :  { %1038 = vmatpush3.bf16.msra.mxu0 %v1123_v20 }
  0x62   :  { %1039 = vmatprep.subr.bf16.mxu0 %v1155_v17 }
  0x65   :  { %1040 = vmatpush3.bf16.msra.mxu0 %v1124_v21 }
  0x66   :  { %1041 = vmatprep.subr.bf16.mxu0 %v1155_v17 }
  0x69   :  { %1042 = vmatpush3.bf16.msra.mxu0 %v1125_v22 }
  0x6a   :  { %1043 = vmatprep.subr.bf16.mxu0 %v1155_v17 }
  0x6d   :  { %1044 = vmatpush3.bf16.msra.mxu0 %v1126_v23 }
  0x6e   :  { %1045 = vmatprep.subr.bf16.mxu0 %v1155_v17 }
  0x71   :  { %1046 = vmatpush3.bf16.msra.mxu0 %v1127_v24 }
 0x107   :  { %v950_v25 = vpop.f32.mrb[0].mxu0 }
 0x108   :  { %v972_v26 = vpop.f32.mrb[0].mxu1  ;;  %v951_v27 = vpop.f32.mrb[1].mxu0 }
 0x109   :  { %v973_v28 = vpop.f32.mrb[1].mxu1  ;;  %v952_v29 = vadd.f32 %v951_v27, %v950_v25  ;;  %v953_v31 = vpop.f32.mrb[2].mxu0 }
 0x10a   :  { %v974_v30 = vadd.f32 %v973_v28, %v972_v26  ;;  %v975_v32 = vpop.f32.mrb[2].mxu1  ;;  %v954_v33 = vpop.f32.mrb[3].mxu0 }
 0x10b   :  { %v976_v34 = vpop.f32.mrb[3].mxu1 }
 0x10c   :  { %v651_v35 = vadd.f32 %v974_v30, %v952_v29 }
 0x127   :  { %v994_v36 = vpop.f32.mrb[4].mxu0 }
 0x128   :  { %v1016_v37 = vpop.f32.mrb[4].mxu1  ;;  %v995_v38 = vpop.f32.mrb[5].mxu0 }
 0x129   :  { %v996_v39 = vadd.f32 %v995_v38, %v994_v36  ;;  %v1017_v40 = vpop.f32.mrb[5].mxu1  ;;  %v997_v41 = vpop.f32.mrb[6].mxu0 }
 0x12a   :  { %v1018_v42 = vadd.f32 %v1017_v40, %v1016_v37  ;;  %v1019_v43 = vpop.f32.mrb[6].mxu1  ;;  %v998_v44 = vpop.f32.mrb[7].mxu0 }
 0x12b   :  { %v691_v45 = vadd.f32 %v996_v39, %v651_v35  ;;  %v1020_v46 = vpop.f32.mrb[7].mxu1 }
 0x12d   :  { %v731_v48 = vadd.f32 %v1018_v42, %v691_v45 }
 0x12f   :  { %v736_v49 = vadd.f32 %v860_v47, %v731_v48 }
 0x131   :  { %v742_v50 = vpack.c.bf16 %v736_v49, %v736_v49 }
 0x133   :  { %1048 = vmatmul.mubr.bf16.vlgmr.msra.gmra.mrb[8].mxu0 %v742_v50 }
 0x206   :  { %v848_v52 = vpop.f32.mrb[8].mxu0 }
 0x207   :  { %v849_v53 = vadd.f32 %v925_v51, %v848_v52  ;;  %v1049_v54 = vpop.f32.mrb[9].mxu0 }
 0x208   :  { %v851_v55 = vpop.f32.mrb[10].mxu0 }
 0x209   :  { %854 = vst [vmem:[%s1261_s5] sm:$0xff] %v849_v53  ;;  %v1050_v56 = vpop.f32.mrb[11].mxu0 }
 0x20a   :  { %859 = vsyncpa [#allocation4], 1 }

</bundles_post_ra>
